<compile_context>
chip_gen: v5e
topology: v5e:2x2
jax: 0.10.0
libtpu: 0.0.40
codegen_flags: <defaults>
</compile_context>

<pallas_src>
import jax
import jax.numpy as jnp
from jax.experimental import pallas as pl
from jax.experimental.pallas import tpu as pltpu


# Per-tile VMEM budget. Input and output tiles are each double-buffered by the
# Pallas pipeline (~4x this in flight), so 2 MiB keeps us comfortably under
# even v5e's 16 MiB default scoped-VMEM limit (and v7x's 64 MiB physical VMEM).
_TILE_BYTES_BUDGET = 2 * 1024 * 1024
_MAX_TILE_ROWS = 1024


def _copy_kernel(w_ref, o_ref):
    # Identity: o <- w (one lane-dense (tile_rows, D) tile per grid step).
    o_ref[...] = w_ref[...]


def _sublane_multiple(dtype) -> int:
    # Sub-32-bit dtypes pack along sublanes; keep the row tile a multiple of
    # the packed sublane count so vregs / DMAs are full-width.
    itemsize = jnp.dtype(dtype).itemsize
    return {4: 8, 2: 16, 1: 32}.get(itemsize, 8)


def _pick_tile_rows(rows: int, row_bytes: int, dtype) -> int:
    sub = _sublane_multiple(dtype)
    if rows <= sub:
        return rows
    budget_rows = max(sub, _TILE_BYTES_BUDGET // max(row_bytes, 1))
    tile = min(rows, _MAX_TILE_ROWS, budget_rows)
    tile = max(sub, (tile // sub) * sub)
    if tile >= rows:
        return rows  # single full-extent block (always legal)
    return tile


def _pallas_passthrough_impl(weights: jax.Array) -> jax.Array:
    """Tiled, aliased identity copy of `weights` through a Pallas TPU kernel.

    This is only scaffolding for concrete Conv1dAdapter subclasses; the
    base-class identity path itself just returns `weights` (see forward()).
    """
    if weights.ndim == 0 or weights.size == 0:
        return weights

    orig_shape = weights.shape
    lanes = orig_shape[-1]
    rows = 1
    for d in orig_shape[:-1]:
        rows *= d
    if rows == 0:
        rows = 1

    w2 = jnp.reshape(weights, (rows, lanes))
    itemsize = jnp.dtype(weights.dtype).itemsize
    tile_r = _pick_tile_rows(rows, lanes * itemsize, weights.dtype)
    grid = (pl.cdiv(rows, tile_r),)

    out2 = pl.pallas_call(
        _copy_kernel,
        out_shape=jax.ShapeDtypeStruct((rows, lanes), weights.dtype),
        grid=grid,
        in_specs=[pl.BlockSpec((tile_r, lanes), lambda r: (r, 0))],
        out_specs=pl.BlockSpec((tile_r, lanes), lambda r: (r, 0)),
        # Alias the output onto the input buffer: no second HBM allocation,
        # XLA treats the copy as in-place.
        input_output_aliases={0: 0},
        compiler_params=pltpu.CompilerParams(
            # Every row tile is independent -> shard across both TCs on v7x.
            dimension_semantics=("parallel",),
        ),
    )(w2)
    return jnp.reshape(out2, orig_shape)


# Jit so the reshape + aliased pallas_call fuse into one program (the alias is
# honored on an intermediate value; no donation warnings in eager mode).
pallas_passthrough = jax.jit(_pallas_passthrough_impl)


class Conv1dAdapterBase:
    """JAX/Pallas port of the PyTorch Conv1dAdapterBase."""

    def __init__(self, *args, **kwargs):
        # The PyTorch __init__ defines no parameters — only the flag.
        self.use_flag = True
        self.input_ids = None

    def forward(self, weights, i):
        if self.use_flag:
            return self._forward(weights, i)
        # Identity pass-through. Per the perf review, the fastest correct
        # implementation is to return the array as-is: a copy kernel would
        # cost 2x the tensor bytes in HBM traffic plus launch overhead for
        # zero compute. (pallas_passthrough above exists as kernel
        # scaffolding for real conv1d subclasses and is exercised in main.)
        return weights

    __call__ = forward

    def _forward(self, weights, i):
        # TODO(synk): abstract in the PyTorch base class (raises
        # NotImplementedError); concrete subclasses implement the actual
        # conv1d adaptation, which would reuse the tiled/aliased Pallas
        # scaffolding above.
        raise NotImplementedError

    def register_input_ids(self, input_ids):
        self.input_ids = input_ids


if __name__ == "__main__":
    key = jax.random.PRNGKey(0)
    k0, k1, k2 = jax.random.split(key, 3)

    # Small synthetic `weights` tensor in (H, L, D) layout; `i` is a layer idx.
    H, L, D = 4, 8, 128
    weights = jax.random.normal(k0, (H, L, D), dtype=jnp.float32)
    i = 0

    adapter = Conv1dAdapterBase()

    # Base-class identity semantics: use_flag=False returns weights unchanged.
    adapter.use_flag = False
    out = adapter(weights, i)
    out = jax.block_until_ready(out)
    assert out.shape == weights.shape and out.dtype == weights.dtype
    assert bool(jnp.array_equal(out, weights))

    # use_flag=True mirrors PyTorch: _forward is abstract.
    adapter.use_flag = True
    try:
        adapter(weights, i)
        raise AssertionError("expected NotImplementedError from _forward")
    except NotImplementedError:
        pass

    # Exercise the Pallas kernel scaffolding itself.
    # 1) Small single-block case (block == full array extents).
    pk_out = jax.block_until_ready(pallas_passthrough(weights))
    assert pk_out.shape == weights.shape and pk_out.dtype == weights.dtype
    assert bool(jnp.array_equal(pk_out, weights))

    # 2) Multi-tile case with a partial edge block: rows = 8*144 = 1152 > 1024
    #    -> grid of 2 row tiles (1024 + 128), still lane-dense (D=128).
    w_big = jax.random.normal(k1, (8, 144, 128), dtype=jnp.float32)
    pk_big = jax.block_until_ready(pallas_passthrough(w_big))
    assert bool(jnp.array_equal(pk_big, w_big))

    # 3) bf16 case (sublane multiple of 16 handled by the tile picker).
    w_bf16 = jax.random.normal(k2, (4, 20, 256), dtype=jnp.float32).astype(jnp.bfloat16)
    pk_bf16 = jax.block_until_ready(pallas_passthrough(w_bf16))
    assert pk_bf16.dtype == jnp.bfloat16
    assert bool(jnp.array_equal(pk_bf16, w_bf16))

    print("KERNEL_OK")
</pallas_src>

<mosaic_0001>
module attributes {stable_mosaic.version = 11 : i64} {
  func.func @_copy_kernel(%arg0: i32, %arg1: memref<32x128xf32, #tpu.memory_space<vmem>>, %arg2: memref<32x128xf32, #tpu.memory_space<vmem>>) attributes {dimension_semantics = [#tpu.dimension_semantics<parallel>], iteration_bounds = array<i64: 1>, scalar_prefetch = 0 : i64, scratch_operands = 0 : i64, tpu.core_type = #tpu.core_type<tc>, window_params = [{transform_indices = @transform_0, window_bounds = array<i64: 32, 128>}, {transform_indices = @transform_1, window_bounds = array<i64: 32, 128>}]} {
    %c0 = arith.constant 0 : index
    %c0_0 = arith.constant 0 : index
    %0 = vector.load %arg1[%c0, %c0_0] : memref<32x128xf32, #tpu.memory_space<vmem>>, vector<32x128xf32>
    %c0_1 = arith.constant 0 : index
    %c0_2 = arith.constant 0 : index
    %1 = vector.load %arg2[%c0_1, %c0_2] : memref<32x128xf32, #tpu.memory_space<vmem>>, vector<32x128xf32>
    tpu.vector_store %arg2[%c0_1, %c0_2], %0 {strides = array<i32>} : memref<32x128xf32, #tpu.memory_space<vmem>>, vector<32x128xf32>,
    return
  }
  func.func @transform_0(%arg0: i32) -> (i32, i32) {
    %c0_i32 = arith.constant 0 : i32
    %c0_i32_0 = arith.constant 0 : i32
    return %arg0, %c0_i32 : i32, i32
  }
  func.func @transform_1(%arg0: i32) -> (i32, i32) {
    %c0_i32 = arith.constant 0 : i32
    %c0_i32_0 = arith.constant 0 : i32
    return %arg0, %c0_i32 : i32, i32
  }
}

</mosaic_0001>

<bundles_post_ra>
// kernel: _pallas_passthrough_impl.1
= control target key start
LH: loop header
LB: loop body
LE: loop exit
PB: predicated region body
PF: predicated region fallthrough
CT: control target
= control target key end

     0   :  { %s54_s0 = inlined_call_operand.vmem [shape: f32[32,128], index: 0, kind: input, shape index: {}, may-alias: {0,1}]   ;;  %s55_s1 = inlined_call_operand.vmem [shape: f32[32,128], index: 1, kind: output, shape index: {}, may-alias: {0,1}]  }
   0x1   :  { %v8_v0 = vld [vmem:[%s54_s0] sm:$0xff]  ;;  %v9_v1 = vld [vmem:[%s54_s0 + $0x8] sm:$0xff]  ;;  %v10_v2 = vld [vmem:[%s54_s0 + $0x10] sm:$0xff] }
   0x2   :  { %12 = vst [vmem:[%s55_s1] sm:$0xff] %v8_v0 }
   0x9   :  { %v11_v3 = vld [vmem:[%s54_s0 + $0x18] sm:$0xff] }
   0xa   :  { %13 = vst [vmem:[%s55_s1 + $0x8] sm:$0xff] %v9_v1 }
   0xb   :  { %14 = vst [vmem:[%s55_s1 + $0x10] sm:$0xff] %v10_v2 }
   0xc   :  { %15 = vst [vmem:[%s55_s1 + $0x18] sm:$0xff] %v11_v3 }

</bundles_post_ra>
